<compile_context>
chip_gen: v7x
topology: tpu7x:2x2x1
jax: 0.10.0
libtpu: 0.0.40
codegen_flags: <defaults>
</compile_context>

<pallas_src>
import functools

import jax
import jax.numpy as jnp
import numpy as np
from jax import lax
from jax.experimental import pallas as pl
from jax.experimental.pallas import tpu as pltpu

NUM_FEATURES = 8          # num_features (divisible by 4 for norm='group')
EPS = 1e-3                # GroupNorm eps
K = 4
STRIDE = 2
PAD = 1
LANE = 128


def _round_up(x, m):
    return (x + m - 1) // m * m


def _conv_gn_kernel(x_ref, w_ref, gamma_ref, beta_ref, o_ref, *,
                    n_groups_blk, cpg, inv_count):
    # x_ref:     (nb*16, Pp)    im2col taps; nb samples packed on sublanes, spatial on lanes
    # w_ref:     (nb*C, nb*16)  block-diagonal conv weight
    # gamma_ref: (nb*C, 1)      GroupNorm affine weight (tiled per packed sample)
    # beta_ref:  (nb*C, 1)      GroupNorm affine bias   (tiled per packed sample)
    # o_ref:     (nb*C, Pp)     conv + GroupNorm output (NCHW-compatible after reshape)
    y = jnp.dot(w_ref[...], x_ref[...], preferred_element_type=jnp.float32)   # (nb*C, Pp)

    # Lane reductions once for the whole block (2 XLU pushes total). Zero-padded spatial
    # columns / padded batch rows contribute zeros; inv_count = 1/(valid_P * cpg) keeps
    # mean and E[y^2] unbiased.
    s = jnp.sum(y, axis=-1, keepdims=True)            # (nb*C, 1)
    ss = jnp.sum(y * y, axis=-1, keepdims=True)       # (nb*C, 1)

    gamma = gamma_ref[...]
    beta = beta_ref[...]

    # Per-group stats from tiny (cpg, 1) sublane slices (VPU adds); static unroll is cheap
    # (a handful of scalar-ish ops per group, n_groups_blk = nb * num_groups).
    scales, biases = [], []
    for g in range(n_groups_blk):
        lo, hi = g * cpg, (g + 1) * cpg
        gs = jnp.sum(s[lo:hi, :], keepdims=True) * inv_count     # (1,1) mean
        gss = jnp.sum(ss[lo:hi, :], keepdims=True) * inv_count   # (1,1) E[y^2]
        var = jnp.maximum(gss - gs * gs, 0.0)                    # clamp f32 cancellation
        inv = lax.rsqrt(var + EPS)
        sc = inv * gamma[lo:hi, :]                               # (cpg, 1)
        scales.append(sc)
        biases.append(beta[lo:hi, :] - gs * sc)

    scale = scales[0] if n_groups_blk == 1 else jnp.concatenate(scales, axis=0)  # (nb*C, 1)
    bias = biases[0] if n_groups_blk == 1 else jnp.concatenate(biases, axis=0)   # (nb*C, 1)

    # Single fused elementwise pass over y and one unmasked, lane-dense full-tile store.
    o_ref[...] = (y * scale + bias).astype(o_ref.dtype)


def _device_defaults():
    """(device_kind, target pack factor, pipelined-block VMEM cap in bytes)."""
    try:
        dk = jax.devices()[0].device_kind.lower()
    except Exception:
        dk = ""
    if "v5" in dk:
        return dk, 8, 100 << 20        # nb*16 = 128 fills the v5e MXU contraction depth
    if "v6" in dk:
        return dk, 16, 100 << 20       # nb*16 = 256 fills the v6e MXU contraction depth
    if "v7" in dk or "7x" in dk:
        return dk, 16, 44 << 20        # 64 MiB/TC physical -> keep pipelined block small
    return dk, 8, 44 << 20             # unknown: conservative


def hierarchical_intro_block(x, conv_w, gamma, beta, num_groups, *, samples_per_step=None):
    """x: (N, 1, H, W), conv_w: (C, 1, 4, 4), gamma/beta: (C,). Returns (N, C, Ho, Wo)."""
    N, Cin, H, W = x.shape
    assert Cin == 1
    C = conv_w.shape[0]
    assert C % num_groups == 0
    cpg = C // num_groups
    Ho = (H + 2 * PAD - K) // STRIDE + 1
    Wo = (W + 2 * PAD - K) // STRIDE + 1
    P = Ho * Wo
    Pp = _round_up(P, LANE)            # lane-align spatial -> unmasked vst stores

    dk, target_nb, vmem_cap = _device_defaults()
    if samples_per_step is None:
        nb = min(target_nb, N)
        if ("v7" in dk or "7x" in dk) and N >= 2:
            # keep >= 2 grid steps so the "parallel" batch axis can split across the 2 TCs
            nb = min(nb, max(1, -(-N // 2)))
    else:
        nb = samples_per_step
    nb = max(1, int(nb))
    Nb = _round_up(N, nb)
    n_steps = Nb // nb

    # Sublane-tiling constraint: when the grid has >1 step the block's second-minor dims
    # must be multiples of 8 (full-extent blocks are exempt).
    if n_steps > 1:
        assert (nb * C) % 8 == 0 and (nb * K * K) % 8 == 0

    # ---- im2col (XLA side, fused into the kernel call via allow_input_fusion). ----
    # TODO(synk): move the im2col fully into the kernel (DMA the padded (H+2, W+2) sample
    # into VMEM and build the 16 taps with strided reads) to remove reliance on XLA fusion.
    xp = jnp.pad(x[:, 0].astype(jnp.float32), ((0, 0), (PAD, PAD), (PAD, PAD)))
    taps = []
    for ki in range(K):
        for kj in range(K):
            taps.append(
                xp[:, ki:ki + STRIDE * Ho:STRIDE, kj:kj + STRIDE * Wo:STRIDE].reshape(N, P))
    patches = jnp.stack(taps, axis=1)                               # (N, 16, P)
    patches = jnp.pad(patches, ((0, Nb - N), (0, 0), (0, Pp - P)))  # zero-pad batch + lanes
    patches = patches.reshape(Nb * K * K, Pp)                       # sample-major rows

    # Block-diagonal conv weight: one MXU matmul per grid step covers all nb samples.
    w_mat = conv_w.reshape(C, K * K).astype(jnp.float32)
    w_bd = jnp.kron(jnp.eye(nb, dtype=jnp.float32), w_mat)          # (nb*C, nb*16)
    gamma_t = jnp.tile(gamma.reshape(C, 1).astype(jnp.float32), (nb, 1))
    beta_t = jnp.tile(beta.reshape(C, 1).astype(jnp.float32), (nb, 1))

    # VMEM accounting: pipelined working set ~ 2x(in block + out block) + params.
    blk_bytes = (nb * K * K * Pp + nb * C * Pp) * 4
    param_bytes = (nb * C * nb * K * K + 2 * nb * C) * 4
    work_set = 2 * blk_bytes + 2 * param_bytes
    assert work_set <= vmem_cap, (
        f"packed block too large for VMEM on {dk or 'tpu'}; lower samples_per_step")
    vmem_limit = int(min(vmem_cap, max(4 * blk_bytes + 2 * param_bytes, 32 << 20)))

    kernel = functools.partial(
        _conv_gn_kernel, n_groups_blk=nb * num_groups, cpg=cpg,
        inv_count=1.0 / float(P * cpg))

    out = pl.pallas_call(
        kernel,
        out_shape=jax.ShapeDtypeStruct((Nb * C, Pp), jnp.float32),
        grid_spec=pltpu.PrefetchScalarGridSpec(
            num_scalar_prefetch=0,
            grid=(n_steps,),
            in_specs=[
                pl.BlockSpec((nb * K * K, Pp), lambda n: (n, 0)),
                pl.BlockSpec((nb * C, nb * K * K), lambda n: (0, 0)),
                pl.BlockSpec((nb * C, 1), lambda n: (0, 0)),
                pl.BlockSpec((nb * C, 1), lambda n: (0, 0)),
            ],
            out_specs=pl.BlockSpec((nb * C, Pp), lambda n: (n, 0)),
        ),
        compiler_params=pltpu.CompilerParams(
            # batch-pack axis is independent -> megacore split on v7x (>=2 steps kept above)
            dimension_semantics=("parallel",),
            vmem_limit_bytes=vmem_limit,
            # let XLA fuse the im2col producer into the kernel call (no HBM round trip)
            allow_input_fusion=[True, False, False, False],
        ),
    )(patches, w_bd, gamma_t, beta_t)

    # (Nb*C, Pp) -> (N, C, Ho, Wo): leading-dim split is free; slice drops batch/lane padding.
    # TODO(synk): consumers that can accept the lane-padded (N, C, Pp) layout should, to skip
    # this depad copy (Pp can be up to 2x P for small feature maps).
    return out.reshape(Nb, C, Pp)[:N, :, :P].reshape(N, C, Ho, Wo)


def _reference(x, conv_w, gamma, beta, num_groups):
    y = lax.conv_general_dilated(
        x.astype(jnp.float32), conv_w.astype(jnp.float32),
        window_strides=(STRIDE, STRIDE), padding=((PAD, PAD), (PAD, PAD)),
        dimension_numbers=("NCHW", "OIHW", "NCHW"))
    N, C, Ho, Wo = y.shape
    yg = y.reshape(N, num_groups, -1)
    mean = yg.mean(-1, keepdims=True)
    var = ((yg - mean) ** 2).mean(-1, keepdims=True)
    yn = ((yg - mean) / jnp.sqrt(var + EPS)).reshape(N, C, Ho, Wo)
    return yn * gamma.reshape(1, C, 1, 1) + beta.reshape(1, C, 1, 1)


if __name__ == "__main__":
    key = jax.random.PRNGKey(0)
    k_x, k_w, k_g, k_b = jax.random.split(key, 4)

    N, H, W = 2, 16, 16
    C = NUM_FEATURES
    num_groups = C // 4                      # norm == 'group'

    x = jax.random.normal(k_x, (N, 1, H, W), dtype=jnp.float32)

    # Conv2d weight: xavier_uniform_, shape (C, 1, 4, 4); bias is None since norm is not None.
    fan_in, fan_out = 1 * K * K, C * K * K
    bound = float(np.sqrt(6.0 / (fan_in + fan_out)))
    conv_w = jax.random.uniform(k_w, (C, 1, K, K), minval=-bound, maxval=bound,
                                dtype=jnp.float32)

    # GroupNorm affine params (PyTorch defaults are weight=1 / bias=0; non-trivial values
    # exercise the folded-affine path — same forward semantics).
    gamma = 1.0 + 0.1 * jax.random.normal(k_g, (C,), dtype=jnp.float32)
    beta = 0.1 * jax.random.normal(k_b, (C,), dtype=jnp.float32)

    ref = jax.block_until_ready(_reference(x, conv_w, gamma, beta, num_groups))

    # Auto (generation-aware) pack factor.
    out = jax.block_until_ready(hierarchical_intro_block(x, conv_w, gamma, beta, num_groups))
    assert out.shape == (N, C, H // 2, W // 2)
    np.testing.assert_allclose(np.asarray(out), np.asarray(ref), rtol=1e-4, atol=1e-4)

    # Explicit 1-sample-per-step path (>= 2 grid steps: the v7x 2-TensorCore-friendly config).
    out1 = jax.block_until_ready(
        hierarchical_intro_block(x, conv_w, gamma, beta, num_groups, samples_per_step=1))
    np.testing.assert_allclose(np.asarray(out1), np.asarray(ref), rtol=1e-4, atol=1e-4)

    print("KERNEL_OK")
</pallas_src>

<mosaic_0001>
module attributes {stable_mosaic.version = 11 : i64} {
  func.func @_conv_gn_kernel(%arg0: i32, %arg1: memref<32x128xf32, #tpu.memory_space<vmem>>, %arg2: memref<16x32xf32, #tpu.memory_space<vmem>>, %arg3: memref<16x1xf32, #tpu.memory_space<vmem>>, %arg4: memref<16x1xf32, #tpu.memory_space<vmem>>, %arg5: memref<16x128xf32, #tpu.memory_space<vmem>>) attributes {dimension_semantics = [#tpu.dimension_semantics<parallel>], iteration_bounds = array<i64: 1>, scalar_prefetch = 0 : i64, scratch_operands = 0 : i64, tpu.core_type = #tpu.core_type<tc>, window_params = [{transform_indices = @transform_0, window_bounds = array<i64: 32, 128>}, {pipeline_mode = #tpu.pipeline_mode<synchronous>, transform_indices = @transform_1, window_bounds = array<i64: 16, 32>}, {pipeline_mode = #tpu.pipeline_mode<synchronous>, transform_indices = @transform_2, window_bounds = array<i64: 16, 1>}, {pipeline_mode = #tpu.pipeline_mode<synchronous>, transform_indices = @transform_3, window_bounds = array<i64: 16, 1>}, {transform_indices = @transform_4, window_bounds = array<i64: 16, 128>}]} {
    %c0 = arith.constant 0 : index
    %c0_0 = arith.constant 0 : index
    %0 = vector.load %arg2[%c0, %c0_0] : memref<16x32xf32, #tpu.memory_space<vmem>>, vector<16x32xf32>
    %c0_1 = arith.constant 0 : index
    %c0_2 = arith.constant 0 : index
    %1 = vector.load %arg1[%c0_1, %c0_2] : memref<32x128xf32, #tpu.memory_space<vmem>>, vector<32x128xf32>
    %cst = arith.constant dense<0.000000e+00> : vector<16x128xf32>
    %2 = tpu.matmul %0, %1, %cst {dimension_numbers = #tpu.dot_dimension_numbers<[1], [0], [0], [1], [0, 0, 1, 1], [], []>} : vector<16x32xf32>, vector<32x128xf32>, vector<16x128xf32> -> vector<16x128xf32>
    %cst_3 = arith.constant dense<0.000000e+00> : vector<16xf32>
    %3 = vector.multi_reduction <add>, %2, %cst_3 [1] : vector<16x128xf32> to vector<16xf32>
    %4 = vector.shape_cast %3 : vector<16xf32> to vector<16x1xf32>
    %5 = arith.mulf %2, %2 : vector<16x128xf32>
    %cst_4 = arith.constant dense<0.000000e+00> : vector<16xf32>
    %6 = vector.multi_reduction <add>, %5, %cst_4 [1] : vector<16x128xf32> to vector<16xf32>
    %7 = vector.shape_cast %6 : vector<16xf32> to vector<16x1xf32>
    %c0_5 = arith.constant 0 : index
    %c0_6 = arith.constant 0 : index
    %8 = vector.load %arg3[%c0_5, %c0_6] : memref<16x1xf32, #tpu.memory_space<vmem>>, vector<16x1xf32>
    %c0_7 = arith.constant 0 : index
    %c0_8 = arith.constant 0 : index
    %9 = vector.load %arg4[%c0_7, %c0_8] : memref<16x1xf32, #tpu.memory_space<vmem>>, vector<16x1xf32>
    %10 = vector.extract_strided_slice %4 {offsets = [0, 0], sizes = [4, 1], strides = [1, 1]} : vector<16x1xf32> to vector<4x1xf32>
    %11 = vector.shape_cast %10 : vector<4x1xf32> to vector<1x4x1xf32>
    %cst_9 = arith.constant dense<0.000000e+00> : vector<1xf32>
    %12 = vector.multi_reduction <add>, %11, %cst_9 [1, 2] : vector<1x4x1xf32> to vector<1xf32>
    %13 = vector.shape_cast %12 : vector<1xf32> to vector<1x1x1xf32>
    %14 = vector.extract %13[0, 0, 0] : f32 from vector<1x1x1xf32>
    %15 = vector.broadcast %14 : f32 to vector<1x1xf32>
    %cst_10 = arith.constant 3.906250e-03 : f32
    %16 = vector.broadcast %cst_10 : f32 to vector<1x1xf32>
    %17 = arith.mulf %15, %16 : vector<1x1xf32>
    %18 = vector.extract_strided_slice %7 {offsets = [0, 0], sizes = [4, 1], strides = [1, 1]} : vector<16x1xf32> to vector<4x1xf32>
    %19 = vector.shape_cast %18 : vector<4x1xf32> to vector<1x4x1xf32>
    %cst_11 = arith.constant dense<0.000000e+00> : vector<1xf32>
    %20 = vector.multi_reduction <add>, %19, %cst_11 [1, 2] : vector<1x4x1xf32> to vector<1xf32>
    %21 = vector.shape_cast %20 : vector<1xf32> to vector<1x1x1xf32>
    %22 = vector.extract %21[0, 0, 0] : f32 from vector<1x1x1xf32>
    %23 = vector.broadcast %22 : f32 to vector<1x1xf32>
    %cst_12 = arith.constant 3.906250e-03 : f32
    %24 = vector.broadcast %cst_12 : f32 to vector<1x1xf32>
    %25 = arith.mulf %23, %24 : vector<1x1xf32>
    %26 = arith.mulf %17, %17 : vector<1x1xf32>
    %27 = arith.subf %25, %26 : vector<1x1xf32>
    %cst_13 = arith.constant 0.000000e+00 : f32
    %28 = vector.broadcast %cst_13 : f32 to vector<1x1xf32>
    %29 = arith.maximumf %27, %28 : vector<1x1xf32>
    %cst_14 = arith.constant 1.000000e-03 : f32
    %30 = vector.broadcast %cst_14 : f32 to vector<1x1xf32>
    %31 = arith.addf %29, %30 : vector<1x1xf32>
    %32 = math.rsqrt %31 : vector<1x1xf32>
    %33 = vector.extract_strided_slice %8 {offsets = [0, 0], sizes = [4, 1], strides = [1, 1]} : vector<16x1xf32> to vector<4x1xf32>
    %34 = vector.broadcast %32 : vector<1x1xf32> to vector<4x1xf32>
    %35 = arith.mulf %34, %33 : vector<4x1xf32>
    %36 = vector.extract_strided_slice %9 {offsets = [0, 0], sizes = [4, 1], strides = [1, 1]} : vector<16x1xf32> to vector<4x1xf32>
    %37 = vector.broadcast %17 : vector<1x1xf32> to vector<4x1xf32>
    %38 = arith.mulf %37, %35 : vector<4x1xf32>
    %39 = arith.subf %36, %38 : vector<4x1xf32>
    %40 = vector.extract_strided_slice %4 {offsets = [4, 0], sizes = [4, 1], strides = [1, 1]} : vector<16x1xf32> to vector<4x1xf32>
    %41 = vector.shape_cast %40 : vector<4x1xf32> to vector<1x4x1xf32>
    %cst_15 = arith.constant dense<0.000000e+00> : vector<1xf32>
    %42 = vector.multi_reduction <add>, %41, %cst_15 [1, 2] : vector<1x4x1xf32> to vector<1xf32>
    %43 = vector.shape_cast %42 : vector<1xf32> to vector<1x1x1xf32>
    %44 = vector.extract %43[0, 0, 0] : f32 from vector<1x1x1xf32>
    %45 = vector.broadcast %44 : f32 to vector<1x1xf32>
    %cst_16 = arith.constant 3.906250e-03 : f32
    %46 = vector.broadcast %cst_16 : f32 to vector<1x1xf32>
    %47 = arith.mulf %45, %46 : vector<1x1xf32>
    %48 = vector.extract_strided_slice %7 {offsets = [4, 0], sizes = [4, 1], strides = [1, 1]} : vector<16x1xf32> to vector<4x1xf32>
    %49 = vector.shape_cast %48 : vector<4x1xf32> to vector<1x4x1xf32>
    %cst_17 = arith.constant dense<0.000000e+00> : vector<1xf32>
    %50 = vector.multi_reduction <add>, %49, %cst_17 [1, 2] : vector<1x4x1xf32> to vector<1xf32>
    %51 = vector.shape_cast %50 : vector<1xf32> to vector<1x1x1xf32>
    %52 = vector.extract %51[0, 0, 0] : f32 from vector<1x1x1xf32>
    %53 = vector.broadcast %52 : f32 to vector<1x1xf32>
    %cst_18 = arith.constant 3.906250e-03 : f32
    %54 = vector.broadcast %cst_18 : f32 to vector<1x1xf32>
    %55 = arith.mulf %53, %54 : vector<1x1xf32>
    %56 = arith.mulf %47, %47 : vector<1x1xf32>
    %57 = arith.subf %55, %56 : vector<1x1xf32>
    %cst_19 = arith.constant 0.000000e+00 : f32
    %58 = vector.broadcast %cst_19 : f32 to vector<1x1xf32>
    %59 = arith.maximumf %57, %58 : vector<1x1xf32>
    %cst_20 = arith.constant 1.000000e-03 : f32
    %60 = vector.broadcast %cst_20 : f32 to vector<1x1xf32>
    %61 = arith.addf %59, %60 : vector<1x1xf32>
    %62 = math.rsqrt %61 : vector<1x1xf32>
    %63 = vector.extract_strided_slice %8 {offsets = [4, 0], sizes = [4, 1], strides = [1, 1]} : vector<16x1xf32> to vector<4x1xf32>
    %64 = vector.broadcast %62 : vector<1x1xf32> to vector<4x1xf32>
    %65 = arith.mulf %64, %63 : vector<4x1xf32>
    %66 = vector.extract_strided_slice %9 {offsets = [4, 0], sizes = [4, 1], strides = [1, 1]} : vector<16x1xf32> to vector<4x1xf32>
    %67 = vector.broadcast %47 : vector<1x1xf32> to vector<4x1xf32>
    %68 = arith.mulf %67, %65 : vector<4x1xf32>
    %69 = arith.subf %66, %68 : vector<4x1xf32>
    %70 = vector.extract_strided_slice %4 {offsets = [8, 0], sizes = [4, 1], strides = [1, 1]} : vector<16x1xf32> to vector<4x1xf32>
    %71 = vector.shape_cast %70 : vector<4x1xf32> to vector<1x4x1xf32>
    %cst_21 = arith.constant dense<0.000000e+00> : vector<1xf32>
    %72 = vector.multi_reduction <add>, %71, %cst_21 [1, 2] : vector<1x4x1xf32> to vector<1xf32>
    %73 = vector.shape_cast %72 : vector<1xf32> to vector<1x1x1xf32>
    %74 = vector.extract %73[0, 0, 0] : f32 from vector<1x1x1xf32>
    %75 = vector.broadcast %74 : f32 to vector<1x1xf32>
    %cst_22 = arith.constant 3.906250e-03 : f32
    %76 = vector.broadcast %cst_22 : f32 to vector<1x1xf32>
    %77 = arith.mulf %75, %76 : vector<1x1xf32>
    %78 = vector.extract_strided_slice %7 {offsets = [8, 0], sizes = [4, 1], strides = [1, 1]} : vector<16x1xf32> to vector<4x1xf32>
    %79 = vector.shape_cast %78 : vector<4x1xf32> to vector<1x4x1xf32>
    %cst_23 = arith.constant dense<0.000000e+00> : vector<1xf32>
    %80 = vector.multi_reduction <add>, %79, %cst_23 [1, 2] : vector<1x4x1xf32> to vector<1xf32>
    %81 = vector.shape_cast %80 : vector<1xf32> to vector<1x1x1xf32>
    %82 = vector.extract %81[0, 0, 0] : f32 from vector<1x1x1xf32>
    %83 = vector.broadcast %82 : f32 to vector<1x1xf32>
    %cst_24 = arith.constant 3.906250e-03 : f32
    %84 = vector.broadcast %cst_24 : f32 to vector<1x1xf32>
    %85 = arith.mulf %83, %84 : vector<1x1xf32>
    %86 = arith.mulf %77, %77 : vector<1x1xf32>
    %87 = arith.subf %85, %86 : vector<1x1xf32>
    %cst_25 = arith.constant 0.000000e+00 : f32
    %88 = vector.broadcast %cst_25 : f32 to vector<1x1xf32>
    %89 = arith.maximumf %87, %88 : vector<1x1xf32>
    %cst_26 = arith.constant 1.000000e-03 : f32
    %90 = vector.broadcast %cst_26 : f32 to vector<1x1xf32>
    %91 = arith.addf %89, %90 : vector<1x1xf32>
    %92 = math.rsqrt %91 : vector<1x1xf32>
    %93 = vector.extract_strided_slice %8 {offsets = [8, 0], sizes = [4, 1], strides = [1, 1]} : vector<16x1xf32> to vector<4x1xf32>
    %94 = vector.broadcast %92 : vector<1x1xf32> to vector<4x1xf32>
    %95 = arith.mulf %94, %93 : vector<4x1xf32>
    %96 = vector.extract_strided_slice %9 {offsets = [8, 0], sizes = [4, 1], strides = [1, 1]} : vector<16x1xf32> to vector<4x1xf32>
    %97 = vector.broadcast %77 : vector<1x1xf32> to vector<4x1xf32>
    %98 = arith.mulf %97, %95 : vector<4x1xf32>
    %99 = arith.subf %96, %98 : vector<4x1xf32>
    %100 = vector.extract_strided_slice %4 {offsets = [12, 0], sizes = [4, 1], strides = [1, 1]} : vector<16x1xf32> to vector<4x1xf32>
    %101 = vector.shape_cast %100 : vector<4x1xf32> to vector<1x4x1xf32>
    %cst_27 = arith.constant dense<0.000000e+00> : vector<1xf32>
    %102 = vector.multi_reduction <add>, %101, %cst_27 [1, 2] : vector<1x4x1xf32> to vector<1xf32>
    %103 = vector.shape_cast %102 : vector<1xf32> to vector<1x1x1xf32>
    %104 = vector.extract %103[0, 0, 0] : f32 from vector<1x1x1xf32>
    %105 = vector.broadcast %104 : f32 to vector<1x1xf32>
    %cst_28 = arith.constant 3.906250e-03 : f32
    %106 = vector.broadcast %cst_28 : f32 to vector<1x1xf32>
    %107 = arith.mulf %105, %106 : vector<1x1xf32>
    %108 = vector.extract_strided_slice %7 {offsets = [12, 0], sizes = [4, 1], strides = [1, 1]} : vector<16x1xf32> to vector<4x1xf32>
    %109 = vector.shape_cast %108 : vector<4x1xf32> to vector<1x4x1xf32>
    %cst_29 = arith.constant dense<0.000000e+00> : vector<1xf32>
    %110 = vector.multi_reduction <add>, %109, %cst_29 [1, 2] : vector<1x4x1xf32> to vector<1xf32>
    %111 = vector.shape_cast %110 : vector<1xf32> to vector<1x1x1xf32>
    %112 = vector.extract %111[0, 0, 0] : f32 from vector<1x1x1xf32>
    %113 = vector.broadcast %112 : f32 to vector<1x1xf32>
    %cst_30 = arith.constant 3.906250e-03 : f32
    %114 = vector.broadcast %cst_30 : f32 to vector<1x1xf32>
    %115 = arith.mulf %113, %114 : vector<1x1xf32>
    %116 = arith.mulf %107, %107 : vector<1x1xf32>
    %117 = arith.subf %115, %116 : vector<1x1xf32>
    %cst_31 = arith.constant 0.000000e+00 : f32
    %118 = vector.broadcast %cst_31 : f32 to vector<1x1xf32>
    %119 = arith.maximumf %117, %118 : vector<1x1xf32>
    %cst_32 = arith.constant 1.000000e-03 : f32
    %120 = vector.broadcast %cst_32 : f32 to vector<1x1xf32>
    %121 = arith.addf %119, %120 : vector<1x1xf32>
    %122 = math.rsqrt %121 : vector<1x1xf32>
    %123 = vector.extract_strided_slice %8 {offsets = [12, 0], sizes = [4, 1], strides = [1, 1]} : vector<16x1xf32> to vector<4x1xf32>
    %124 = vector.broadcast %122 : vector<1x1xf32> to vector<4x1xf32>
    %125 = arith.mulf %124, %123 : vector<4x1xf32>
    %126 = vector.extract_strided_slice %9 {offsets = [12, 0], sizes = [4, 1], strides = [1, 1]} : vector<16x1xf32> to vector<4x1xf32>
    %127 = vector.broadcast %107 : vector<1x1xf32> to vector<4x1xf32>
    %128 = arith.mulf %127, %125 : vector<4x1xf32>
    %129 = arith.subf %126, %128 : vector<4x1xf32>
    %130 = tpu.concatenate %35, %65, %95, %125 in 0 : vector<4x1xf32>, vector<4x1xf32>, vector<4x1xf32>, vector<4x1xf32> -> vector<16x1xf32>
    %131 = tpu.concatenate %39, %69, %99, %129 in 0 : vector<4x1xf32>, vector<4x1xf32>, vector<4x1xf32>, vector<4x1xf32> -> vector<16x1xf32>
    %132 = vector.broadcast %130 : vector<16x1xf32> to vector<16x128xf32>
    %133 = arith.mulf %2, %132 : vector<16x128xf32>
    %134 = vector.broadcast %131 : vector<16x1xf32> to vector<16x128xf32>
    %135 = arith.addf %133, %134 : vector<16x128xf32>
    %c0_33 = arith.constant 0 : index
    %c0_34 = arith.constant 0 : index
    %136 = vector.load %arg5[%c0_33, %c0_34] : memref<16x128xf32, #tpu.memory_space<vmem>>, vector<16x128xf32>
    tpu.vector_store %arg5[%c0_33, %c0_34], %135 {strides = array<i32>} : memref<16x128xf32, #tpu.memory_space<vmem>>, vector<16x128xf32>,
    return
  }
  func.func @transform_0(%arg0: i32) -> (i32, i32) {
    %c0_i32 = arith.constant 0 : i32
    %c0_i32_0 = arith.constant 0 : i32
    return %arg0, %c0_i32 : i32, i32
  }
  func.func @transform_1(%arg0: i32) -> (i32, i32) {
    %c0_i32 = arith.constant 0 : i32
    %c0_i32_0 = arith.constant 0 : i32
    %c0_i32_1 = arith.constant 0 : i32
    return %c0_i32, %c0_i32_0 : i32, i32
  }
  func.func @transform_2(%arg0: i32) -> (i32, i32) {
    %c0_i32 = arith.constant 0 : i32
    %c0_i32_0 = arith.constant 0 : i32
    %c0_i32_1 = arith.constant 0 : i32
    return %c0_i32, %c0_i32_0 : i32, i32
  }
  func.func @transform_3(%arg0: i32) -> (i32, i32) {
    %c0_i32 = arith.constant 0 : i32
    %c0_i32_0 = arith.constant 0 : i32
    %c0_i32_1 = arith.constant 0 : i32
    return %c0_i32, %c0_i32_0 : i32, i32
  }
  func.func @transform_4(%arg0: i32) -> (i32, i32) {
    %c0_i32 = arith.constant 0 : i32
    %c0_i32_0 = arith.constant 0 : i32
    return %arg0, %c0_i32 : i32, i32
  }
}

</mosaic_0001>

<bundles_post_ra>
// kernel: tpu_custom_call.1
= control target key start
LH: loop header
LB: loop body
LE: loop exit
PB: predicated region body
PF: predicated region fallthrough
CT: control target
= control target key end

     0   :  { %9 = vsyncpa [#allocation3], 0  ;;  %s537_s0 = inlined_call_operand.vmem [shape: f32[32,128], index: 0, kind: input, shape index: {}]   ;;  %s538_s1 = inlined_call_operand.hbm [shape: f32[16,32], index: 1, kind: input, shape index: {}]   ;;  %s539_s2 = inlined_call_operand.vmem [shape: f32[16,1], index: 2, kind: input, shape index: {}]   ;;  %s540_s3 = inlined_call_operand.vmem [shape: f32[16,1], index: 3, kind: input, shape index: {}]   ;;  %s541_s4 = inlined_call_operand.hbm [shape: f32[16,128], index: 4, kind: output, shape index: {}]  }
   0x1   :  { %10 = vsyncpa [#allocation4], 0  ;;  %s429_s15 = smov [#allocation2]   ;;  %s381_s19 = scalar_lea.hbm %s538_s1, 256 }
   0x2   :  { %s18_s16 = sshll.u32 %s429_s15, 4  ;;  %p382_p0 = scmp.ne.s32.totalorder %s538_s1, %s381_s19  ;;  %s19_s16 = int_to_ptr.vmem [resolvable:$true] %s18_s16 }
   0x3   :  { %p385_p1 = scmp.lt.u32.totalorder %s381_s19, %s538_s1 }
   0x5   :  { %p387_p2 = pnand %p385_p1, %p382_p0 }
   0x7   :  { %390 = shalt.err (!%p387_p2)
}
   0x8   :  { %s391_s24 = scalar_lea.vmem %s19_s16, 256  ;;  %p396_p4 = scmp.lt.s32.totalorder %s19_s16, %s19_s16 }
   0x9   :  { %p392_p3 = scmp.ne.s32.totalorder %s19_s16, %s391_s24  ;;  %p397_p5 = scmp.lt.s32.totalorder %s391_s24, %s391_s24 }
   0xb   :  { %p398_p6 = por %p397_p5, %p396_p4 }
   0xd   :  { %p399_p7 = pnand %p398_p6, %p392_p3 }
   0xf   :  { %402 = shalt.err (!%p399_p7)
}
  0x10   :  { %s430_s25 = smov 128   ;;  %s431_s26 = smov 8  }
  0x11   :  { %24 = dma.hbm_to_vmem [thread:$0]  %s538_s1, 256, %s19_s16, [#allocation3], %s430_s25, %s430_s25, %s431_s26  }
  0x12   :  { %425 = dma.done.wait [#allocation3], 256  }
  0x13   :  { %426 = vsyncadd [#allocation3], 4294967040  ;;  %vm38_vm0 = vcmask 261120   ;;  %v34_v0 = vld [vmem:[%s537_s0] sm:$0xff]  ;;  %v35_v1 = vld [vmem:[%s537_s0 + $0x8] sm:$0xff]  ;;  %vm134_vm1 = vcmask 3072  }
  0x14   :  { %v36_v2 = vld [vmem:[%s537_s0 + $0x10] sm:$0xff]  ;;  %v342_v3 = vpack.c.bf16 %v35_v1, %v34_v0  ;;  %v37_v4 = vld [vmem:[%s537_s0 + $0x18] sm:$0xff]  ;;  %v32_v5 = vld [vmem:[#allocation2] sm:$0xff]  ;;  %v432_v28 = vmov 0   ;;  %vm275_vm2 = vcmask 1043456  }
  0x15   :  { %v346_v6 = vpack.c.bf16 %v37_v4, %v36_v2  ;;  %339 = vmatprep.mubr.msk.f32.mxu0 %vm38_vm0, %v32_v5  ;;  %v33_v7 = vld [vmem:[#allocation2 + $0x8] sm:$0xff]  ;;  %371 = vset.pattern.permute.xlu0 %v432_v28 }
  0x16   :  { %343 = vmatprep.subr.bf16.mxu0 %v342_v3  ;;  %372 = vset.pattern.permute.xlu1 %v432_v28 }
  0x17   :  { %345 = vmatpush3.bf16.msra.mxu0 %v342_v3 }
  0x18   :  { %347 = vmatprep.subr.bf16.mxu0 %v346_v6 }
  0x1b   :  { %349 = vmatpush3.bf16.msra.mxu0 %v346_v6 }
  0x1e   :  { %340 = vmatmul.mubr.msk.f32.vlgmr.msra.gmra.mrb[0].mxu0 %vm38_vm0, %v33_v7 }
  0xf1   :  { %v486_v8 = vpop.f32.mrb[0].mxu0 }
  0xf2   :  { %v488_v9 = vpop.f32.mrb[1].mxu0  ;;  %v125_v11 = vmul.f32 %v486_v8, %v486_v8 }
  0xf3   :  { %120 = vadd.xlane.f32.xlu0 %v488_v9  ;;  %v124_v10 = vmul.f32 %v488_v9, %v488_v9 }
  0xf5   :  { %126 = vadd.xlane.f32.xlu1 %v124_v10 }
  0xf7   :  { %122 = vadd.xlane.f32.xlu0 %v486_v8 }
  0xf9   :  { %128 = vadd.xlane.f32.xlu1 %v125_v11 }
 0x180   :  { %v121_v12 = vpop.xlane.xlu0 %120 }
 0x181   :  { %v168_v18 = vrot.slane %v121_v12, 4  ;;  %v135_v19 = vsel %vm134_vm1, %v121_v12, 0.0 }
 0x182   :  { %v127_v13 = vpop.xlane.xlu1 %126 }
 0x183   :  { %v183_v20 = vrot.slane %v127_v13, 4  ;;  %v147_v21 = vsel %vm134_vm1, %v127_v13, 0.0  ;;  %v170_v23 = vsel %vm134_vm1, %v168_v18, 0.0 }
 0x184   :  { %v123_v14 = vpop.xlane.xlu0 %122 }
 0x185   :  { %v205_v15 = vsel %vm134_vm1, %v123_v14, 0.0  ;;  %v238_v22 = vrot.slane %v123_v14, 4  ;;  %v185_v25 = vsel %vm134_vm1, %v183_v20, 0.0 }
 0x186   :  { %206 = vadd.xlane.f32.xlu0 %v205_v15  ;;  %v129_v16 = vpop.xlane.xlu1 %128 }
 0x187   :  { %v217_v17 = vsel %vm134_vm1, %v129_v16, 0.0  ;;  %v253_v24 = vrot.slane %v129_v16, 4  ;;  %v240_v26 = vsel %vm134_vm1, %v238_v22, 0.0 }
 0x188   :  { %218 = vadd.xlane.f32.xlu1 %v217_v17 }
 0x189   :  { %v255_v27 = vsel %vm134_vm1, %v253_v24, 0.0 }
 0x18a   :  { %136 = vadd.xlane.f32.xlu0 %v135_v19 }
 0x18c   :  { %148 = vadd.xlane.f32.xlu1 %v147_v21 }
 0x18e   :  { %171 = vadd.xlane.f32.xlu0 %v170_v23 }
 0x190   :  { %186 = vadd.xlane.f32.xlu1 %v185_v25 }
 0x192   :  { %241 = vadd.xlane.f32.xlu0 %v240_v26 }
 0x194   :  { %256 = vadd.xlane.f32.xlu1 %v255_v27 }
 0x213   :  { %v207_v29 = vpop.xlane.xlu0 %206 }
 0x214   :  { %v208_v30 = vrot.slane %v207_v29, 4 }
 0x215   :  { %v219_v31 = vpop.xlane.xlu1 %218 }
 0x216   :  { %v220_v32 = vrot.slane %v219_v31, 4  ;;  %v209_v35 = vadd.f32 %v208_v30, %v207_v29 }
 0x217   :  { %v137_v33 = vpop.xlane.xlu0 %136 }
 0x218   :  { %v138_v34 = vrot.slane %v137_v33, 4  ;;  %v221_v36 = vadd.f32 %v220_v32, %v219_v31  ;;  %v210_v44 = vrot.slane %v209_v35, 2 }
 0x219   :  { %v149_v37 = vpop.xlane.xlu1 %148 }
 0x21a   :  { %v139_v38 = vadd.f32 %v138_v34, %v137_v33  ;;  %v150_v39 = vrot.slane %v149_v37, 4  ;;  %v222_v45 = vrot.slane %v221_v36, 2  ;;  %v211_v58 = vadd.f32 %v210_v44, %v209_v35 }
 0x21b   :  { %v172_v40 = vpop.xlane.xlu0 %171 }
 0x21c   :  { %v140_v41 = vrot.slane %v139_v38, 2  ;;  %v151_v42 = vadd.f32 %v150_v39, %v149_v37  ;;  %v173_v43 = vrot.slane %v172_v40, 4  ;;  %v223_v59 = vadd.f32 %v222_v45, %v221_v36 }
 0x21d   :  { %v187_v46 = vpop.xlane.xlu1 %186  ;;  %v212_v7 = vrot.slane %v211_v58, 1 }
 0x21e   :  { %v152_v47 = vrot.slane %v151_v42, 2  ;;  %v174_v48 = vadd.f32 %v173_v43, %v172_v40  ;;  %v188_v49 = vrot.slane %v187_v46, 4  ;;  %v141_v50 = vadd.f32 %v140_v41, %v139_v38 }
 0x21f   :  { %v242_v51 = vpop.xlane.xlu0 %241  ;;  %v224_v12 = vrot.slane %v223_v59, 1  ;;  %v213_v18 = vadd.f32 %v212_v7, %v211_v58 }
 0x220   :  { %v175_v52 = vrot.slane %v174_v48, 2  ;;  %v189_v53 = vadd.f32 %v188_v49, %v187_v46  ;;  %v243_v54 = vrot.slane %v242_v51, 4  ;;  %v142_v55 = vrot.slane %v141_v50, 1 }
 0x221   :  { %v257_v56 = vpop.xlane.xlu1 %256  ;;  %v153_v57 = vadd.f32 %v152_v47, %v151_v42  ;;  %v225_v19 = vadd.f32 %v224_v12, %v223_v59  ;;  %v133_v12 = vld [vmem:[%s540_s3 + $0x8] sm:$0xff] }
 0x222   :  { %v190_v60 = vrot.slane %v189_v53, 2  ;;  %v244_v61 = vadd.f32 %v243_v54, %v242_v51  ;;  %v258_v62 = vrot.slane %v257_v56, 4  ;;  %v143_v63 = vadd.f32 %v142_v55, %v141_v50 }
 0x223   :  { %v154_v0 = vrot.slane %v153_v57, 1  ;;  %v176_v1 = vadd.f32 %v175_v52, %v174_v48 }
 0x224   :  { %v245_v2 = vrot.slane %v244_v61, 2  ;;  %v259_v3 = vadd.f32 %v258_v62, %v257_v56  ;;  %350 = vpush %v143_v63  ;;  %v191_v4 = vadd.f32 %v190_v60, %v189_v53  ;;  %v130_v56 = vld [vmem:[%s539_s2] sm:$0xff]  ;;  %v131_v62 = vld [vmem:[%s539_s2 + $0x8] sm:$0xff]  ;;  %s433_s2 = smov [#allocation5]  }
 0x225   :  { %v155_v5 = vadd.f32 %v154_v0, %v153_v57  ;;  %v177_v6 = vrot.slane %v176_v1, 1  ;;  %s311_s27 = sshll.u32 %s433_s2, 4  ;;  %s312_s27 = int_to_ptr.vmem [resolvable:$true] %s311_s27 }
 0x226   :  { %v260_v10 = vrot.slane %v259_v3, 2  ;;  %v192_v11 = vrot.slane %v191_v4, 1  ;;  %v246_v13 = vadd.f32 %v245_v2, %v244_v61  ;;  %p408_p9 = scmp.lt.s32.totalorder %s312_s27, %s312_s27 }
 0x227   :  { %352 = vpush %v155_v5  ;;  %v178_v14 = vadd.f32 %v177_v6, %v176_v1 }
 0x228   :  { %v193_v15 = vadd.f32 %v192_v11, %v191_v4  ;;  %v247_v16 = vrot.slane %v246_v13, 1  ;;  %v261_v17 = vadd.f32 %v260_v10, %v259_v3  ;;  %v132_v4 = vld [vmem:[%s540_s3] sm:$0xff]  ;;  %s403_s3 = scalar_lea.vmem %s312_s27, 256 }
 0x229   :  { %354 = vpush %v178_v14  ;;  %p404_p8 = scmp.ne.s32.totalorder %s312_s27, %s403_s3  ;;  %p409_p10 = scmp.lt.s32.totalorder %s403_s3, %s403_s3 }
 0x22a   :  { %356 = vpush %v193_v15  ;;  %v248_v20 = vadd.f32 %v247_v16, %v246_v13  ;;  %v262_v21 = vrot.slane %v261_v17, 1 }
 0x22b   :  { %358 = vpush %v213_v18  ;;  %p410_p11 = por %p409_p10, %p408_p9 }
 0x22c   :  { %360 = vpush %v225_v19  ;;  %v263_v22 = vadd.f32 %v262_v21, %v261_v17 }
 0x22d   :  { %362 = vpush %v248_v20  ;;  %p411_p12 = pnand %p410_p11, %p404_p8 }
 0x22e   :  { %364 = vpush %v263_v22 }
 0x255   :  { %s351_s0 = spop %350 }
 0x256   :  { %v145_v23 = vstv %s351_s0 }
 0x257   :  { %v146_v24 = vmul.f32 0.00390625, %v145_v23 }
 0x258   :  { %s353_s1 = spop %352 }
 0x259   :  { %v159_v25 = vmul.f32 %v146_v24, %v146_v24  ;;  %v157_v26 = vstv %s353_s1 }
 0x25a   :  { %v158_v27 = vmul.f32 0.00390625, %v157_v26  ;;  %s355_s11 = spop %354 }
 0x25b   :  { %v180_v28 = vstv %s355_s11  ;;  %s357_s12 = spop %356 }
 0x25c   :  { %v160_v29 = vsub.f32 %v158_v27, %v159_v25  ;;  %v181_v30 = vmul.f32 0.00390625, %v180_v28  ;;  %v195_v31 = vstv %s357_s12  ;;  %s359_s13 = spop %358 }
 0x25d   :  { %v196_v32 = vmul.f32 0.00390625, %v195_v31  ;;  %v215_v33 = vstv %s359_s13  ;;  %s361_s14 = spop %360 }
 0x25e   :  { %v161_v34 = vmax.f32 %v160_v29, 0.0  ;;  %v197_v35 = vmul.f32 %v181_v30, %v181_v30  ;;  %v216_v36 = vmul.f32 0.00390625, %v215_v33  ;;  %v227_v37 = vstv %s361_s14  ;;  %s363_s15 = spop %362 }
 0x25f   :  { %v228_v38 = vmul.f32 0.00390625, %v227_v37  ;;  %v250_v39 = vstv %s363_s15  ;;  %s365_s16 = spop %364 }
 0x260   :  { %v162_v40 = vadd.f32 0.001, %v161_v34  ;;  %v198_v41 = vsub.f32 %v196_v32, %v197_v35  ;;  %v229_v42 = vmul.f32 %v216_v36, %v216_v36  ;;  %v251_v43 = vmul.f32 0.00390625, %v250_v39 }
 0x261   :  { %v265_v44 = vstv %s365_s16 }
 0x262   :  { %v199_v45 = vmax.f32 %v198_v41, 0.0  ;;  %v230_v46 = vsub.f32 %v228_v38, %v229_v42  ;;  %v267_v47 = vmul.f32 %v251_v43, %v251_v43  ;;  %v266_v48 = vmul.f32 0.00390625, %v265_v44 }
 0x263   :  { %373 = vrsqrt.f32 %v162_v40 }
 0x264   :  { %v200_v49 = vadd.f32 0.001, %v199_v45  ;;  %v231_v50 = vmax.f32 %v230_v46, 0.0  ;;  %v268_v51 = vsub.f32 %v266_v48, %v267_v47 }
 0x266   :  { %375 = vrsqrt.f32 %v200_v49  ;;  %v232_v52 = vadd.f32 0.001, %v231_v50  ;;  %v269_v53 = vmax.f32 %v268_v51, 0.0 }
 0x268   :  { %377 = vrsqrt.f32 %v232_v52  ;;  %v270_v54 = vadd.f32 0.001, %v269_v53 }
 0x26a   :  { %379 = vrsqrt.f32 %v270_v54 }
 0x26d   :  { %v374_v55 = vpop.eup %373 }
 0x26e   :  { %v164_v58 = vmul.f32 %v374_v55, %v130_v56 }
 0x270   :  { %v376_v57 = vpop.eup %375  ;;  %v165_v3 = vmul.f32 %v164_v58, %v146_v24 }
 0x271   :  { %v202_v59 = vmul.f32 %v376_v57, %v130_v56 }
 0x272   :  { %v378_v60 = vpop.eup %377  ;;  %v166_v10 = vsub.f32 %v132_v4, %v165_v3 }
 0x273   :  { %v276_v61 = vsel %vm275_vm2, %v164_v58, %v202_v59  ;;  %v203_v63 = vmul.f32 %v202_v59, %v181_v30  ;;  %v234_v1 = vmul.f32 %v378_v60, %v131_v62 }
 0x274   :  { %282 = vperm.xlu0 %371, %v276_v61   ;;  %v380_v0 = vpop.eup %379 }
 0x275   :  { %v272_v2 = vmul.f32 %v380_v0, %v131_v62  ;;  %v204_v6 = vsub.f32 %v132_v4, %v203_v63  ;;  %v235_v11 = vmul.f32 %v234_v1, %v216_v36 }
 0x277   :  { %v277_v5 = vsel %vm275_vm2, %v234_v1, %v272_v2  ;;  %v273_v7 = vmul.f32 %v272_v2, %v251_v43  ;;  %v278_v13 = vsel %vm275_vm2, %v166_v10, %v204_v6  ;;  %v236_v15 = vsub.f32 %v133_v12, %v235_v11 }
 0x278   :  { %287 = vperm.xlu1 %372, %v277_v5  }
 0x279   :  { %v274_v14 = vsub.f32 %v133_v12, %v273_v7 }
 0x27b   :  { %v279_v16 = vsel %vm275_vm2, %v236_v15, %v274_v14 }
 0x27c   :  { %294 = vperm.xlu1 %372, %v278_v13  }
 0x280   :  { %299 = vperm.xlu1 %372, %v279_v16  }
 0x2f3   :  { %v283_v17 = vpop.permute.xlu0 %282 }
 0x2f4   :  { %v290_v19 = vmul.f32 %v283_v17, %v488_v9 }
 0x2f7   :  { %v288_v18 = vpop.permute.xlu1 %287 }
 0x2f8   :  { %v291_v22 = vmul.f32 %v486_v8, %v288_v18 }
 0x2fb   :  { %v295_v20 = vpop.permute.xlu1 %294 }
 0x2fc   :  { %v302_v21 = vadd.f32 %v295_v20, %v290_v19 }
 0x2fe   :  { %304 = vst [vmem:[#allocation5] sm:$0xff] %v302_v21 }
 0x2ff   :  { %v300_v23 = vpop.permute.xlu1 %299 }
 0x300   :  { %v303_v24 = vadd.f32 %v300_v23, %v291_v22 }
 0x302   :  { %305 = vst [vmem:[#allocation5 + $0x8] sm:$0xff] %v303_v24 }
 0x303   :  { %414 = shalt.err (!%p411_p12)
}
 0x304   :  { %s415_s30 = scalar_lea.hbm %s541_s4, 256 }
 0x305   :  { %p416_p13 = scmp.ne.s32.totalorder %s541_s4, %s415_s30  ;;  %p419_p0 = scmp.lt.u32.totalorder %s415_s30, %s541_s4 }
 0x307   :  { %p421_p1 = pnand %p419_p0, %p416_p13 }
 0x309   :  { %424 = shalt.err (!%p421_p1)
}
 0x30a   :  { %317 = dma.vmem_to_hbm [thread:$0]  %s312_s27, 256, %s541_s4, [#allocation4], %s430_s25, %s430_s25, %s431_s26  }
 0x30b   :  { %427 = dma.done.wait [#allocation4], 256  }
 0x30c   :  { %428 = vsyncadd [#allocation4], 4294967040 }
 0x30d   :  { %321 = vsyncpa [#allocation3], 1 }
 0x30e   :  { %322 = vsyncpa [#allocation4], 1 }

</bundles_post_ra>
